<compile_context>
chip_gen: v7x
topology: tpu7x:2x2x1
jax: 0.10.0
libtpu: 0.0.40
codegen_flags: <defaults>
</compile_context>

<pallas_src>
import numpy as np
import jax
import jax.numpy as jnp
from jax.experimental import pallas as pl
from jax.experimental.pallas import tpu as pltpu

# ~2 MiB per buffer: past the ~1 MiB roofline knee, and with 4 buffers
# (in + out, double-buffered) only ~8 MiB of VMEM -> safe on v5e/v6e/v7x.
_TARGET_BLOCK_BYTES = 2 * 1024 * 1024
_VMEM_LIMIT_BYTES = 32 * 1024 * 1024  # v7x scoped default; a raise on v5e/v6e.


def _zero_kernel(x_ref, o_ref):
    # Elementwise multiply-by-zero on a (bb, H, W) tile.
    # Keeps NaN/Inf -> NaN and signed-zero behavior identical to torch's x.mul(0.0).
    o_ref[...] = x_ref[...] * jnp.asarray(0.0, dtype=x_ref.dtype)


def _zero_mul_nchw(x4d):
    """Multiply an NCHW tensor by 0.0 with a tiled, pipelined Pallas kernel.

    Operates on the collapsed (N*C, H, W) view (free reshape of leading dims),
    so there is no relayout, no padding and no trailing-slice copy around the
    kernel -- the only HBM traffic is one read + one write of the tensor.
    """
    N, C, H, W = x4d.shape
    B = N * C
    x3 = x4d.reshape(B, H, W)  # merges major dims only -> no data movement

    itemsize = np.dtype(x4d.dtype).itemsize
    slab_bytes = H * W * itemsize
    # Batch-block sized for ~2 MiB per buffer; at least 1 image per step.
    bb = int(max(1, min(B, _TARGET_BLOCK_BYTES // max(slab_bytes, 1))))
    grid = (pl.cdiv(B, bb),)  # ragged last block handled by Pallas

    total = B * H * W
    out3 = pl.pallas_call(
        _zero_kernel,
        out_shape=jax.ShapeDtypeStruct((B, H, W), x4d.dtype),
        grid=grid,
        in_specs=[pl.BlockSpec((bb, H, W), lambda i: (i, 0, 0))],
        out_specs=pl.BlockSpec((bb, H, W), lambda i: (i, 0, 0)),
        compiler_params=pltpu.CompilerParams(
            dimension_semantics=(pltpu.PARALLEL,),
            vmem_limit_bytes=_VMEM_LIMIT_BYTES,
        ),
        cost_estimate=pl.CostEstimate(
            flops=total,
            transcendentals=0,
            bytes_accessed=2 * total * itemsize,
        ),
    )(x3)

    return out3.reshape(N, C, H, W)


def zero_forward(x_nchw, stride):
    """Pallas implementation of Zero.forward for an NCHW tensor."""
    if stride == 1:
        return _zero_mul_nchw(x_nchw)
    # TODO(synk): fully fusing the ::stride spatial subsample into the
    # pallas_call needs either sub-8-sublane blocks (H block of 1 row) or a
    # lane-dimension compaction inside the kernel, both of which are risky to
    # lower on Mosaic; the subsample stays a wrapper-level strided slice and
    # the (much smaller) result goes through the same optimized kernel.
    x_s = x_nchw[:, :, ::stride, ::stride]
    return _zero_mul_nchw(x_s)


# ---------------- pure-JAX reference (for verification) ----------------
def reference(x, stride):
    if stride == 1:
        return x * 0.0
    return x[:, :, ::stride, ::stride] * 0.0


if __name__ == "__main__":
    N, C, H, W = 2, 4, 16, 16
    key = jax.random.PRNGKey(0)
    x = jax.random.normal(key, (N, C, H, W), dtype=jnp.float32)
    # Inject a NaN and an Inf to check that x.mul(0.0) propagation is preserved.
    x = x.at[0, 0, 0, 0].set(jnp.nan)
    x = x.at[1, 2, 4, 6].set(jnp.inf)

    # stride = 1 path
    out1 = jax.block_until_ready(zero_forward(x, stride=1))
    ref1 = jax.block_until_ready(reference(x, stride=1))
    assert out1.shape == ref1.shape == (N, C, H, W)
    np.testing.assert_allclose(np.asarray(out1), np.asarray(ref1), rtol=0, atol=0)

    # stride = 2 path (strided spatial subsample, then zero)
    out2 = jax.block_until_ready(zero_forward(x, stride=2))
    ref2 = jax.block_until_ready(reference(x, stride=2))
    assert out2.shape == ref2.shape == (N, C, H // 2, W // 2)
    np.testing.assert_allclose(np.asarray(out2), np.asarray(ref2), rtol=0, atol=0)

    print("KERNEL_OK")
</pallas_src>

<mosaic_0001>
module attributes {stable_mosaic.version = 11 : i64} {
  func.func @_zero_kernel(%arg0: i32, %arg1: memref<8x16x16xf32, #tpu.memory_space<vmem>>, %arg2: memref<8x16x16xf32, #tpu.memory_space<vmem>>) attributes {dimension_semantics = [#tpu.dimension_semantics<parallel>], iteration_bounds = array<i64: 1>, scalar_prefetch = 0 : i64, scratch_operands = 0 : i64, tpu.core_type = #tpu.core_type<tc>, window_params = [{transform_indices = @transform_0, window_bounds = array<i64: 8, 16, 16>}, {transform_indices = @transform_1, window_bounds = array<i64: 8, 16, 16>}]} {
    %c0 = arith.constant 0 : index
    %c0_0 = arith.constant 0 : index
    %c0_1 = arith.constant 0 : index
    %0 = vector.load %arg1[%c0, %c0_0, %c0_1] : memref<8x16x16xf32, #tpu.memory_space<vmem>>, vector<8x16x16xf32>
    %cst = arith.constant 0.000000e+00 : f32
    %1 = vector.broadcast %cst : f32 to vector<8x16x16xf32>
    %2 = arith.mulf %0, %1 : vector<8x16x16xf32>
    %c0_2 = arith.constant 0 : index
    %c0_3 = arith.constant 0 : index
    %c0_4 = arith.constant 0 : index
    %3 = vector.load %arg2[%c0_2, %c0_3, %c0_4] : memref<8x16x16xf32, #tpu.memory_space<vmem>>, vector<8x16x16xf32>
    tpu.vector_store %arg2[%c0_2, %c0_3, %c0_4], %2 {strides = array<i32>} : memref<8x16x16xf32, #tpu.memory_space<vmem>>, vector<8x16x16xf32>,
    return
  }
  func.func @transform_0(%arg0: i32) -> (i32, i32, i32) {
    %c0_i32 = arith.constant 0 : i32
    %c0_i32_0 = arith.constant 0 : i32
    %c0_i32_1 = arith.constant 0 : i32
    return %arg0, %c0_i32, %c0_i32_0 : i32, i32, i32
  }
  func.func @transform_1(%arg0: i32) -> (i32, i32, i32) {
    %c0_i32 = arith.constant 0 : i32
    %c0_i32_0 = arith.constant 0 : i32
    %c0_i32_1 = arith.constant 0 : i32
    return %arg0, %c0_i32, %c0_i32_0 : i32, i32, i32
  }
}

</mosaic_0001>

<bundles_post_ra>
// kernel: tpu_custom_call.1
= control target key start
LH: loop header
LB: loop body
LE: loop exit
PB: predicated region body
PF: predicated region fallthrough
CT: control target
= control target key end

     0   :  { %6 = vsyncpa [#allocation3], 0  ;;  %s204_s0 = inlined_call_operand.hbm [shape: f32[8,16,16], index: 0, kind: input, shape index: {}]   ;;  %s205_s1 = inlined_call_operand.hbm [shape: f32[8,16,16], index: 1, kind: output, shape index: {}]  }
   0x1   :  { %7 = vsyncpa [#allocation4], 0  ;;  %s141_s6 = smov [#allocation2]   ;;  %s93_s10 = scalar_lea.hbm %s204_s0, 2048 }
   0x2   :  { %s13_s7 = sshll.u32 %s141_s6, 4  ;;  %p94_p0 = scmp.ne.s32.totalorder %s204_s0, %s93_s10  ;;  %s14_s7 = int_to_ptr.vmem [resolvable:$true] %s13_s7 }
   0x3   :  { %p97_p1 = scmp.lt.u32.totalorder %s93_s10, %s204_s0 }
   0x5   :  { %p99_p2 = pnand %p97_p1, %p94_p0 }
   0x7   :  { %102 = shalt.err (!%p99_p2)
}
   0x8   :  { %s103_s15 = scalar_lea.vmem %s14_s7, 2048  ;;  %p108_p4 = scmp.lt.s32.totalorder %s14_s7, %s14_s7 }
   0x9   :  { %p104_p3 = scmp.ne.s32.totalorder %s14_s7, %s103_s15  ;;  %p109_p5 = scmp.lt.s32.totalorder %s103_s15, %s103_s15 }
   0xb   :  { %p110_p6 = por %p109_p5, %p108_p4 }
   0xd   :  { %p111_p7 = pnand %p110_p6, %p104_p3 }
   0xf   :  { %114 = shalt.err (!%p111_p7)
}
  0x10   :  { %s142_s16 = smov 128   ;;  %s143_s17 = smov 8  }
  0x11   :  { %19 = dma.hbm_to_vmem [thread:$0]  %s204_s0, 2048, %s14_s7, [#allocation3], %s142_s16, %s142_s16, %s143_s17  }
  0x12   :  { %137 = dma.done.wait [#allocation3], 2048  }
  0x13   :  { %138 = vsyncadd [#allocation3], 4294965248  ;;  %v23_v0 = vld [vmem:[#allocation2] sm:$0xff]  ;;  %vm55_vm0 = vcmask 130048   ;;  %v24_v1 = vld [vmem:[#allocation2 + $0x8] sm:$0xff]  ;;  %s144_s20 = smov [#allocation5]  }
  0x14   :  { %v25_v2 = vld [vmem:[#allocation2 + $0x10] sm:$0xff]  ;;  %s170_s21 = sshll.u32 %s144_s20, 4  ;;  %v39_v3 = vmul.f32 0.0, %v23_v0  ;;  %v40_v4 = vmul.f32 0.0, %v24_v1  ;;  %v26_v6 = vld [vmem:[#allocation2 + $0x18] sm:$0xff]  ;;  %v27_v7 = vld [vmem:[#allocation2 + $0x20] sm:$0xff]  ;;  %s78_s21 = int_to_ptr.vmem [resolvable:$true] %s170_s21 }
  0x15   :  { %v41_v5 = vmul.f32 0.0, %v25_v2  ;;  %v28_v8 = vld [vmem:[#allocation2 + $0x28] sm:$0xff]  ;;  %v42_v9 = vmul.f32 0.0, %v26_v6  ;;  %v43_v10 = vmul.f32 0.0, %v27_v7  ;;  %v29_v12 = vld [vmem:[#allocation2 + $0x30] sm:$0xff]  ;;  %v30_v13 = vld [vmem:[#allocation2 + $0x38] sm:$0xff]  ;;  %p120_p9 = scmp.lt.s32.totalorder %s78_s21, %s78_s21 }
  0x16   :  { %v44_v11 = vmul.f32 0.0, %v28_v8  ;;  %v31_v14 = vld [vmem:[#allocation2 + $0x40] sm:$0xff]  ;;  %56 = vst.msk [vmem:[#allocation5] sm:$0xff] %vm55_vm0, %v39_v3  ;;  %57 = vst.msk [vmem:[#allocation5 + $0x8] sm:$0xff] %vm55_vm0, %v40_v4  ;;  %v45_v15 = vmul.f32 0.0, %v29_v12  ;;  %v46_v16 = vmul.f32 0.0, %v30_v13 }
  0x17   :  { %58 = vst.msk [vmem:[#allocation5 + $0x10] sm:$0xff] %vm55_vm0, %v41_v5  ;;  %v47_v17 = vmul.f32 0.0, %v31_v14  ;;  %v32_v18 = vld [vmem:[#allocation2 + $0x48] sm:$0xff]  ;;  %v33_v19 = vld [vmem:[#allocation2 + $0x50] sm:$0xff]  ;;  %v34_v20 = vld [vmem:[#allocation2 + $0x58] sm:$0xff]  ;;  %s115_s0 = scalar_lea.vmem %s78_s21, 2048 }
  0x18   :  { %59 = vst.msk [vmem:[#allocation5 + $0x18] sm:$0xff] %vm55_vm0, %v42_v9  ;;  %60 = vst.msk [vmem:[#allocation5 + $0x20] sm:$0xff] %vm55_vm0, %v43_v10  ;;  %v48_v21 = vmul.f32 0.0, %v32_v18  ;;  %v49_v22 = vmul.f32 0.0, %v33_v19  ;;  %v50_v23 = vmul.f32 0.0, %v34_v20  ;;  %v35_v24 = vld [vmem:[#allocation2 + $0x60] sm:$0xff]  ;;  %p116_p8 = scmp.ne.s32.totalorder %s78_s21, %s115_s0  ;;  %p121_p10 = scmp.lt.s32.totalorder %s115_s0, %s115_s0 }
  0x19   :  { %61 = vst.msk [vmem:[#allocation5 + $0x28] sm:$0xff] %vm55_vm0, %v44_v11  ;;  %v36_v25 = vld [vmem:[#allocation2 + $0x68] sm:$0xff]  ;;  %v37_v26 = vld [vmem:[#allocation2 + $0x70] sm:$0xff]  ;;  %62 = vst.msk [vmem:[#allocation5 + $0x30] sm:$0xff] %vm55_vm0, %v45_v15  ;;  %v51_v27 = vmul.f32 0.0, %v35_v24 }
  0x1a   :  { %63 = vst.msk [vmem:[#allocation5 + $0x38] sm:$0xff] %vm55_vm0, %v46_v16  ;;  %64 = vst.msk [vmem:[#allocation5 + $0x40] sm:$0xff] %vm55_vm0, %v47_v17  ;;  %v52_v28 = vmul.f32 0.0, %v36_v25  ;;  %v53_v29 = vmul.f32 0.0, %v37_v26  ;;  %v38_v30 = vld [vmem:[#allocation2 + $0x78] sm:$0xff]  ;;  %p122_p11 = por %p121_p10, %p120_p9 }
  0x1b   :  { %65 = vst.msk [vmem:[#allocation5 + $0x48] sm:$0xff] %vm55_vm0, %v48_v21  ;;  %66 = vst.msk [vmem:[#allocation5 + $0x50] sm:$0xff] %vm55_vm0, %v49_v22  ;;  %v54_v31 = vmul.f32 0.0, %v38_v30 }
  0x1c   :  { %67 = vst.msk [vmem:[#allocation5 + $0x58] sm:$0xff] %vm55_vm0, %v50_v23  ;;  %68 = vst.msk [vmem:[#allocation5 + $0x60] sm:$0xff] %vm55_vm0, %v51_v27  ;;  %p123_p12 = pnand %p122_p11, %p116_p8 }
  0x1d   :  { %69 = vst.msk [vmem:[#allocation5 + $0x68] sm:$0xff] %vm55_vm0, %v52_v28  ;;  %70 = vst.msk [vmem:[#allocation5 + $0x70] sm:$0xff] %vm55_vm0, %v53_v29 }
  0x1e   :  { %71 = vst.msk [vmem:[#allocation5 + $0x78] sm:$0xff] %vm55_vm0, %v54_v31 }
  0x1f   :  { %126 = shalt.err (!%p123_p12)
}
  0x20   :  { %s127_s24 = scalar_lea.hbm %s205_s1, 2048 }
  0x21   :  { %p128_p13 = scmp.ne.s32.totalorder %s205_s1, %s127_s24  ;;  %p131_p0 = scmp.lt.u32.totalorder %s127_s24, %s205_s1 }
  0x23   :  { %p133_p1 = pnand %p131_p0, %p128_p13 }
  0x25   :  { %136 = shalt.err (!%p133_p1)
}
  0x26   :  { %83 = dma.vmem_to_hbm [thread:$0]  %s78_s21, 2048, %s205_s1, [#allocation4], %s142_s16, %s142_s16, %s143_s17  }
  0x27   :  { %139 = dma.done.wait [#allocation4], 2048  }
  0x28   :  { %140 = vsyncadd [#allocation4], 4294965248 }
  0x29   :  { %87 = vsyncpa [#allocation3], 1 }
  0x2a   :  { %88 = vsyncpa [#allocation4], 1 }

</bundles_post_ra>
